<compile_context>
chip_gen: v7x
topology: tpu7x:2x2x1
jax: 0.10.0
libtpu: 0.0.40
codegen_flags: <defaults>
</compile_context>

<pallas_src>
import numpy as np
import jax
import jax.numpy as jnp
from jax import lax
from jax.experimental import pallas as pl
from jax.experimental.pallas import tpu as pltpu


# ----------------------------- Pallas kernel --------------------------------

def lenet_kernel(x_ref, w1_ref, w2_ref, fc_ref, b_ref, o_ref):
    f32, bf16 = jnp.float32, jnp.bfloat16
    tb = x_ref.shape[0]                       # images in this grid step

    def mm(a, b):
        return jnp.dot(a, b, preferred_element_type=f32)

    # ---- build the 6 overlapping 8x28 strips in-kernel, strip-major rows ---
    # strip r of an image = input rows [4r, 4r+8) = lanes [112r, 112r+224)
    x = x_ref[...]                                                # (tb, 784) bf16
    strips = jnp.concatenate(
        [x[:, 112 * r:112 * r + 224] for r in range(6)], axis=0)  # (6tb, 224)

    # ---- conv1 + relu + 2x2 maxpool (pool phases packed in weight columns) -
    h1 = jnp.maximum(mm(strips, w1_ref[...]) + b_ref[0:1, :], 0.0)   # (6tb,576) f32
    z1 = jnp.maximum(jnp.maximum(h1[:, 0:144], h1[:, 144:288]),
                     jnp.maximum(h1[:, 288:432], h1[:, 432:576]))    # (6tb,144)
    z1 = z1.astype(bf16)

    # ---- conv2 + relu + pool: 3 vertical taps fused into one K=432 matmul --
    # strip-major layout => tap k of row j is plain row j + k*tb; only rows
    # [0, 4tb) (pool2 rows 0..3 of every image) are needed downstream.
    z1cat = jnp.concatenate(
        [z1[0:4 * tb], z1[tb:5 * tb], z1[2 * tb:6 * tb]], axis=1)    # (4tb,432)
    c2 = jnp.maximum(mm(z1cat, w2_ref[...]) + b_ref[1:2, 0:192], 0.0)
    y2 = jnp.maximum(jnp.maximum(c2[:, 0:48], c2[:, 48:96]),
                     jnp.maximum(c2[:, 96:144], c2[:, 144:192]))     # (4tb,48)
    y2 = y2.astype(bf16)

    # ---- fc1: the 4 pool2 rows fused into one K=192 matmul on tb rows ------
    y2cat = jnp.concatenate(
        [y2[0:tb], y2[tb:2 * tb], y2[2 * tb:3 * tb], y2[3 * tb:4 * tb]],
        axis=1)                                                      # (tb,192)
    g1 = jnp.maximum(mm(y2cat, fc_ref[0:192, :]) + b_ref[2:3, 0:128], 0.0)

    # ---- fc2 + relu, output layer (one row per image, lane-dense 128) ------
    g2 = jnp.maximum(mm(g1.astype(bf16), fc_ref[192:320, :])
                     + b_ref[3:4, 0:128], 0.0)
    o_ref[...] = mm(g2.astype(bf16), fc_ref[320:448, :]) + b_ref[4:5, 0:128]


# --------------------------- pallas_call wrapper -----------------------------

def pick_tb(batch):
    # Multi-step grids need tb % 8 == 0 (sublane-aligned blocks); prefer >= 2
    # grid steps so both v7x TensorCores get work; cap the tile at 128 images
    # (768 MXU rows) to stay far under v7x's 64 MiB VMEM.
    for tb in (128, 64, 32, 16, 8):
        if batch >= 2 * tb and batch % tb == 0:
            return tb
    if batch > 128:
        return 128            # batch gets zero-padded up to a multiple of 128
    return batch              # small batch: one grid step, block == full array


def fused_forward(x2d, prepped, tb):
    w1, w2c, fcs, bias = prepped
    bp = x2d.shape[0]
    grid = (bp // tb,)

    flops_per_img = 2 * (6 * 224 * 576 + 4 * 432 * 192
                         + 192 * 128 + 128 * 128 + 128 * 128)
    w_bytes = sum(int(np.prod(a.shape)) * a.dtype.itemsize for a in prepped)
    cost = pl.CostEstimate(
        flops=flops_per_img * bp,
        transcendentals=0,
        bytes_accessed=bp * 784 * 2 + w_bytes + bp * 128 * 4)

    return pl.pallas_call(
        lenet_kernel,
        out_shape=jax.ShapeDtypeStruct((bp, 128), jnp.float32),
        grid=grid,
        in_specs=[
            pl.BlockSpec((tb, 784), lambda i: (i, 0)),     # raw image rows
            pl.BlockSpec(w1.shape, lambda i: (0, 0)),      # conv1 slab
            pl.BlockSpec(w2c.shape, lambda i: (0, 0)),     # conv2 slab
            pl.BlockSpec(fcs.shape, lambda i: (0, 0)),     # fc1/fc2/out slab
            pl.BlockSpec(bias.shape, lambda i: (0, 0)),    # bias slab
        ],
        out_specs=pl.BlockSpec((tb, 128), lambda i: (i, 0)),
        compiler_params=pltpu.CompilerParams(
            dimension_semantics=("parallel",),
            vmem_limit_bytes=32 * 1024 * 1024),
        cost_estimate=cost,
    )(x2d, w1, w2c, fcs, bias)


def network_forward(x_nchw, prepped):
    b = x_nchw.shape[0]
    tb = pick_tb(b)
    bp = -(-b // tb) * tb
    x = x_nchw.reshape(b, 28 * 28).astype(jnp.bfloat16)    # raw image, bf16
    if bp != b:
        x = jnp.pad(x, ((0, bp - b), (0, 0)))
    out = fused_forward(x, prepped, tb)                    # (bp, 128)
    return out[:b, :10]


# ----------------- one-time weight repacking (hoisted out of forward) --------

def prepare_params(params):
    (c1w, c1b, c2w, c2b, f1w, f1b, f2w, f2b, ow, ob) = params
    f32, bf16 = jnp.float32, jnp.bfloat16

    # conv1: strip (8x28=224 lanes) -> 576 cols = (phase p1,q1 | ri | C | rj | co)
    rows, cols, kidx = [], [], []
    for p1 in range(2):
        for q1 in range(2):
            for ri in range(2):
                for C in range(6):
                    for rj in range(2):
                        for co in range(6):
                            col = (p1 * 2 + q1) * 144 + ri * 72 + C * 12 + rj * 6 + co
                            for kh in range(5):
                                for kw in range(5):
                                    tr = 2 * ri + p1 + kh
                                    tc = 4 * C + 2 * rj + q1 + kw
                                    rows.append(tr * 28 + tc)
                                    cols.append(col)
                                    kidx.append((co * 5 + kh) * 5 + kw)
    w1 = jnp.zeros((224, 576), f32).at[np.array(rows), np.array(cols)].set(
        c1w.reshape(-1)[np.array(kidx)])
    b1 = jnp.tile(c1b, 96)                                  # (576,)

    # conv2: 3 vertical taps stacked -> (432, 192)
    # rows per tap: 144 = (ri | C | rj | ci); cols: 192 = (p2,q2 | J | co2)
    w2_list = []
    for dR in range(3):
        rows, cols, kidx = [], [], []
        for ri in range(2):
            for C in range(6):
                for rj in range(2):
                    for ci in range(6):
                        row = ri * 72 + C * 12 + rj * 6 + ci
                        for p2 in range(2):
                            for q2 in range(2):
                                for J in range(4):
                                    kh = 2 * dR + ri - p2
                                    kw = 2 * C + rj - 2 * J - q2
                                    if 0 <= kh < 5 and 0 <= kw < 5:
                                        for co2 in range(12):
                                            rows.append(row)
                                            cols.append((p2 * 2 + q2) * 48 + J * 12 + co2)
                                            kidx.append(((co2 * 6 + ci) * 5 + kh) * 5 + kw)
        w2_list.append(jnp.zeros((144, 192), f32).at[np.array(rows), np.array(cols)].set(
            c2w.reshape(-1)[np.array(kidx)]))
    w2cat = jnp.concatenate(w2_list, axis=0)                # (432, 192)
    b2 = jnp.tile(c2b, 16)                                  # (192,)

    # fc1: one (48, 128) weight per pool2 row, stacked -> (192, 128),
    # matching PyTorch (C,H,W) flatten order.
    f1_list = []
    for I in range(4):
        feat = np.zeros((48,), np.int32)
        for J in range(4):
            for co2 in range(12):
                feat[J * 12 + co2] = co2 * 16 + I * 4 + J
        m = f1w[:, feat].T                                  # (48, 120)
        f1_list.append(jnp.pad(m, ((0, 0), (0, 8))))        # (48, 128)
    f1cat = jnp.concatenate(f1_list, axis=0)                # (192, 128)
    f2p = jnp.zeros((128, 128), f32).at[:120, :60].set(f2w.T)
    f3p = jnp.zeros((128, 128), f32).at[:60, :10].set(ow.T)
    fc_slab = jnp.concatenate([f1cat, f2p, f3p], axis=0)    # (448, 128)

    # bias slab: one sublane per layer, zero-padded to 576 lanes
    bias = jnp.zeros((5, 576), f32)
    bias = bias.at[0, :576].set(b1)
    bias = bias.at[1, :192].set(b2)
    bias = bias.at[2, :120].set(f1b)
    bias = bias.at[3, :60].set(f2b)
    bias = bias.at[4, :10].set(ob)

    # bf16 matmul operands (f32 accumulate in-kernel); biases stay f32.
    return (w1.astype(bf16), w2cat.astype(bf16), fc_slab.astype(bf16), bias)


# ------------------------ deterministic parameter init ----------------------

def init_params(key):
    ks = jax.random.split(key, 10)

    def u(k, shape, fan_in):
        bound = 1.0 / np.sqrt(fan_in)
        return jax.random.uniform(k, shape, jnp.float32, -bound, bound)

    c1w = u(ks[0], (6, 1, 5, 5), 25)
    c1b = u(ks[1], (6,), 25)
    c2w = u(ks[2], (12, 6, 5, 5), 150)
    c2b = u(ks[3], (12,), 150)
    f1w = u(ks[4], (120, 192), 192)
    f1b = u(ks[5], (120,), 192)
    f2w = u(ks[6], (60, 120), 120)
    f2b = u(ks[7], (60,), 120)
    ow = u(ks[8], (10, 60), 60)
    ob = u(ks[9], (10,), 60)
    return (c1w, c1b, c2w, c2b, f1w, f1b, f2w, f2b, ow, ob)


# --------------------------- pure-JAX reference ------------------------------

def reference_forward(x_nchw, params):
    (c1w, c1b, c2w, c2b, f1w, f1b, f2w, f2b, ow, ob) = params

    def conv(x, w, b):
        y = lax.conv_general_dilated(
            x, w, (1, 1), 'VALID', dimension_numbers=('NCHW', 'OIHW', 'NCHW'))
        return y + b[None, :, None, None]

    def pool(y):
        bb, c, hh, ww = y.shape
        return y.reshape(bb, c, hh // 2, 2, ww // 2, 2).max(axis=(3, 5))

    t = pool(jnp.maximum(conv(x_nchw, c1w, c1b), 0.0))
    t = pool(jnp.maximum(conv(t, c2w, c2b), 0.0))
    t = t.reshape(t.shape[0], 12 * 4 * 4)
    t = jnp.maximum(t @ f1w.T + f1b, 0.0)
    t = jnp.maximum(t @ f2w.T + f2b, 0.0)
    return t @ ow.T + ob


if __name__ == "__main__":
    key = jax.random.PRNGKey(0)
    kx, kp = jax.random.split(key)
    params = init_params(kp)
    prepped = prepare_params(params)        # one-time weight repacking (hoisted)

    fwd = jax.jit(network_forward)

    # small-batch check (single grid step, block == full array)
    x_small = jax.random.normal(kx, (2, 1, 28, 28), jnp.float32)   # NCHW
    out_s = jax.block_until_ready(fwd(x_small, prepped))
    ref_s = reference_forward(x_small, params)
    assert out_s.shape == (2, 10), out_s.shape
    err_s = float(jnp.max(jnp.abs(out_s - ref_s)))

    # multi-tile check (tb=16, grid=(2,), exercises the tiled/parallel path)
    x_big = jax.random.normal(kx, (32, 1, 28, 28), jnp.float32)
    out_b = jax.block_until_ready(fwd(x_big, prepped))
    ref_b = reference_forward(x_big, params)
    assert out_b.shape == (32, 10), out_b.shape
    err_b = float(jnp.max(jnp.abs(out_b - ref_b)))

    # bf16 matmul operands (per perf review) => ~1e-2 scale error vs f32 ref;
    # the pure-f32 variant of this kernel met 2e-3.
    assert err_s < 3e-2 and err_b < 3e-2, (err_s, err_b)
    print("KERNEL_OK")
</pallas_src>

<mosaic_0001>
module attributes {stable_mosaic.version = 11 : i64} {
  func.func @lenet_kernel(%arg0: i32, %arg1: memref<2x784xbf16, #tpu.memory_space<vmem>>, %arg2: memref<224x576xbf16, #tpu.memory_space<vmem>>, %arg3: memref<432x192xbf16, #tpu.memory_space<vmem>>, %arg4: memref<448x128xbf16, #tpu.memory_space<vmem>>, %arg5: memref<5x576xf32, #tpu.memory_space<vmem>>, %arg6: memref<2x128xf32, #tpu.memory_space<vmem>>) attributes {dimension_semantics = [#tpu.dimension_semantics<parallel>], iteration_bounds = array<i64: 1>, scalar_prefetch = 0 : i64, scratch_operands = 0 : i64, tpu.core_type = #tpu.core_type<tc>, window_params = [{transform_indices = @transform_0, window_bounds = array<i64: 2, 784>}, {pipeline_mode = #tpu.pipeline_mode<synchronous>, transform_indices = @transform_1, window_bounds = array<i64: 224, 576>}, {pipeline_mode = #tpu.pipeline_mode<synchronous>, transform_indices = @transform_2, window_bounds = array<i64: 432, 192>}, {pipeline_mode = #tpu.pipeline_mode<synchronous>, transform_indices = @transform_3, window_bounds = array<i64: 448, 128>}, {pipeline_mode = #tpu.pipeline_mode<synchronous>, transform_indices = @transform_4, window_bounds = array<i64: 5, 576>}, {transform_indices = @transform_5, window_bounds = array<i64: 2, 128>}]} {
    %c0 = arith.constant 0 : index
    %c0_0 = arith.constant 0 : index
    %0 = vector.load %arg1[%c0, %c0_0] : memref<2x784xbf16, #tpu.memory_space<vmem>>, vector<2x784xbf16>
    %1 = vector.extract_strided_slice %0 {offsets = [0, 0], sizes = [2, 224], strides = [1, 1]} : vector<2x784xbf16> to vector<2x224xbf16>
    %2 = vector.extract_strided_slice %0 {offsets = [0, 112], sizes = [2, 224], strides = [1, 1]} : vector<2x784xbf16> to vector<2x224xbf16>
    %3 = vector.extract_strided_slice %0 {offsets = [0, 224], sizes = [2, 224], strides = [1, 1]} : vector<2x784xbf16> to vector<2x224xbf16>
    %4 = vector.extract_strided_slice %0 {offsets = [0, 336], sizes = [2, 224], strides = [1, 1]} : vector<2x784xbf16> to vector<2x224xbf16>
    %5 = vector.extract_strided_slice %0 {offsets = [0, 448], sizes = [2, 224], strides = [1, 1]} : vector<2x784xbf16> to vector<2x224xbf16>
    %6 = vector.extract_strided_slice %0 {offsets = [0, 560], sizes = [2, 224], strides = [1, 1]} : vector<2x784xbf16> to vector<2x224xbf16>
    %7 = tpu.concatenate %1, %2, %3, %4, %5, %6 in 0 : vector<2x224xbf16>, vector<2x224xbf16>, vector<2x224xbf16>, vector<2x224xbf16>, vector<2x224xbf16>, vector<2x224xbf16> -> vector<12x224xbf16>
    %c0_1 = arith.constant 0 : index
    %c0_2 = arith.constant 0 : index
    %8 = vector.load %arg2[%c0_1, %c0_2] : memref<224x576xbf16, #tpu.memory_space<vmem>>, vector<224x576xbf16>
    %cst = arith.constant dense<0.000000e+00> : vector<12x576xf32>
    %9 = tpu.matmul %7, %8, %cst {dimension_numbers = #tpu.dot_dimension_numbers<[1], [0], [0], [1], [0, 0, 1, 1], [], []>} : vector<12x224xbf16>, vector<224x576xbf16>, vector<12x576xf32> -> vector<12x576xf32>
    %c0_3 = arith.constant 0 : index
    %c0_4 = arith.constant 0 : index
    %10 = vector.load %arg5[%c0_3, %c0_4] : memref<5x576xf32, #tpu.memory_space<vmem>>, vector<1x576xf32>
    %11 = vector.broadcast %10 : vector<1x576xf32> to vector<12x576xf32>
    %12 = arith.addf %9, %11 : vector<12x576xf32>
    %cst_5 = arith.constant 0.000000e+00 : f32
    %13 = vector.broadcast %cst_5 : f32 to vector<12x576xf32>
    %14 = arith.maximumf %12, %13 : vector<12x576xf32>
    %15 = vector.extract_strided_slice %14 {offsets = [0, 0], sizes = [12, 144], strides = [1, 1]} : vector<12x576xf32> to vector<12x144xf32>
    %16 = vector.extract_strided_slice %14 {offsets = [0, 144], sizes = [12, 144], strides = [1, 1]} : vector<12x576xf32> to vector<12x144xf32>
    %17 = arith.maximumf %15, %16 : vector<12x144xf32>
    %18 = vector.extract_strided_slice %14 {offsets = [0, 288], sizes = [12, 144], strides = [1, 1]} : vector<12x576xf32> to vector<12x144xf32>
    %19 = vector.extract_strided_slice %14 {offsets = [0, 432], sizes = [12, 144], strides = [1, 1]} : vector<12x576xf32> to vector<12x144xf32>
    %20 = arith.maximumf %18, %19 : vector<12x144xf32>
    %21 = arith.maximumf %17, %20 : vector<12x144xf32>
    %22 = arith.truncf %21 : vector<12x144xf32> to vector<12x144xbf16>
    %23 = vector.extract_strided_slice %22 {offsets = [0, 0], sizes = [8, 144], strides = [1, 1]} : vector<12x144xbf16> to vector<8x144xbf16>
    %24 = vector.extract_strided_slice %22 {offsets = [2, 0], sizes = [8, 144], strides = [1, 1]} : vector<12x144xbf16> to vector<8x144xbf16>
    %25 = vector.extract_strided_slice %22 {offsets = [4, 0], sizes = [8, 144], strides = [1, 1]} : vector<12x144xbf16> to vector<8x144xbf16>
    %26 = tpu.concatenate %23, %24, %25 in 1 : vector<8x144xbf16>, vector<8x144xbf16>, vector<8x144xbf16> -> vector<8x432xbf16>
    %c0_6 = arith.constant 0 : index
    %c0_7 = arith.constant 0 : index
    %27 = vector.load %arg3[%c0_6, %c0_7] : memref<432x192xbf16, #tpu.memory_space<vmem>>, vector<432x192xbf16>
    %cst_8 = arith.constant dense<0.000000e+00> : vector<8x192xf32>
    %28 = tpu.matmul %26, %27, %cst_8 {dimension_numbers = #tpu.dot_dimension_numbers<[1], [0], [0], [1], [0, 0, 1, 1], [], []>} : vector<8x432xbf16>, vector<432x192xbf16>, vector<8x192xf32> -> vector<8x192xf32>
    %c1 = arith.constant 1 : index
    %c0_9 = arith.constant 0 : index
    %29 = vector.load %arg5[%c1, %c0_9] : memref<5x576xf32, #tpu.memory_space<vmem>>, vector<1x192xf32>
    %30 = vector.broadcast %29 : vector<1x192xf32> to vector<8x192xf32>
    %31 = arith.addf %28, %30 : vector<8x192xf32>
    %cst_10 = arith.constant 0.000000e+00 : f32
    %32 = vector.broadcast %cst_10 : f32 to vector<8x192xf32>
    %33 = arith.maximumf %31, %32 : vector<8x192xf32>
    %34 = vector.extract_strided_slice %33 {offsets = [0, 0], sizes = [8, 48], strides = [1, 1]} : vector<8x192xf32> to vector<8x48xf32>
    %35 = vector.extract_strided_slice %33 {offsets = [0, 48], sizes = [8, 48], strides = [1, 1]} : vector<8x192xf32> to vector<8x48xf32>
    %36 = arith.maximumf %34, %35 : vector<8x48xf32>
    %37 = vector.extract_strided_slice %33 {offsets = [0, 96], sizes = [8, 48], strides = [1, 1]} : vector<8x192xf32> to vector<8x48xf32>
    %38 = vector.extract_strided_slice %33 {offsets = [0, 144], sizes = [8, 48], strides = [1, 1]} : vector<8x192xf32> to vector<8x48xf32>
    %39 = arith.maximumf %37, %38 : vector<8x48xf32>
    %40 = arith.maximumf %36, %39 : vector<8x48xf32>
    %41 = arith.truncf %40 : vector<8x48xf32> to vector<8x48xbf16>
    %42 = vector.extract_strided_slice %41 {offsets = [0, 0], sizes = [2, 48], strides = [1, 1]} : vector<8x48xbf16> to vector<2x48xbf16>
    %43 = vector.extract_strided_slice %41 {offsets = [2, 0], sizes = [2, 48], strides = [1, 1]} : vector<8x48xbf16> to vector<2x48xbf16>
    %44 = vector.extract_strided_slice %41 {offsets = [4, 0], sizes = [2, 48], strides = [1, 1]} : vector<8x48xbf16> to vector<2x48xbf16>
    %45 = vector.extract_strided_slice %41 {offsets = [6, 0], sizes = [2, 48], strides = [1, 1]} : vector<8x48xbf16> to vector<2x48xbf16>
    %46 = tpu.concatenate %42, %43, %44, %45 in 1 : vector<2x48xbf16>, vector<2x48xbf16>, vector<2x48xbf16>, vector<2x48xbf16> -> vector<2x192xbf16>
    %c0_11 = arith.constant 0 : index
    %c0_12 = arith.constant 0 : index
    %47 = vector.load %arg4[%c0_11, %c0_12] : memref<448x128xbf16, #tpu.memory_space<vmem>>, vector<192x128xbf16>
    %cst_13 = arith.constant dense<0.000000e+00> : vector<2x128xf32>
    %48 = tpu.matmul %46, %47, %cst_13 {dimension_numbers = #tpu.dot_dimension_numbers<[1], [0], [0], [1], [0, 0, 1, 1], [], []>} : vector<2x192xbf16>, vector<192x128xbf16>, vector<2x128xf32> -> vector<2x128xf32>
    %c2 = arith.constant 2 : index
    %c0_14 = arith.constant 0 : index
    %49 = vector.load %arg5[%c2, %c0_14] : memref<5x576xf32, #tpu.memory_space<vmem>>, vector<1x128xf32>
    %50 = vector.broadcast %49 : vector<1x128xf32> to vector<2x128xf32>
    %51 = arith.addf %48, %50 : vector<2x128xf32>
    %cst_15 = arith.constant 0.000000e+00 : f32
    %52 = vector.broadcast %cst_15 : f32 to vector<2x128xf32>
    %53 = arith.maximumf %51, %52 : vector<2x128xf32>
    %54 = arith.truncf %53 : vector<2x128xf32> to vector<2x128xbf16>
    %c192 = arith.constant 192 : index
    %c0_16 = arith.constant 0 : index
    %55 = vector.load %arg4[%c192, %c0_16] : memref<448x128xbf16, #tpu.memory_space<vmem>>, vector<128x128xbf16>
    %cst_17 = arith.constant dense<0.000000e+00> : vector<2x128xf32>
    %56 = tpu.matmul %54, %55, %cst_17 {dimension_numbers = #tpu.dot_dimension_numbers<[1], [0], [0], [1], [0, 0, 1, 1], [], []>} : vector<2x128xbf16>, vector<128x128xbf16>, vector<2x128xf32> -> vector<2x128xf32>
    %c3 = arith.constant 3 : index
    %c0_18 = arith.constant 0 : index
    %57 = vector.load %arg5[%c3, %c0_18] : memref<5x576xf32, #tpu.memory_space<vmem>>, vector<1x128xf32>
    %58 = vector.broadcast %57 : vector<1x128xf32> to vector<2x128xf32>
    %59 = arith.addf %56, %58 : vector<2x128xf32>
    %cst_19 = arith.constant 0.000000e+00 : f32
    %60 = vector.broadcast %cst_19 : f32 to vector<2x128xf32>
    %61 = arith.maximumf %59, %60 : vector<2x128xf32>
    %62 = arith.truncf %61 : vector<2x128xf32> to vector<2x128xbf16>
    %c320 = arith.constant 320 : index
    %c0_20 = arith.constant 0 : index
    %63 = vector.load %arg4[%c320, %c0_20] : memref<448x128xbf16, #tpu.memory_space<vmem>>, vector<128x128xbf16>
    %cst_21 = arith.constant dense<0.000000e+00> : vector<2x128xf32>
    %64 = tpu.matmul %62, %63, %cst_21 {dimension_numbers = #tpu.dot_dimension_numbers<[1], [0], [0], [1], [0, 0, 1, 1], [], []>} : vector<2x128xbf16>, vector<128x128xbf16>, vector<2x128xf32> -> vector<2x128xf32>
    %c4 = arith.constant 4 : index
    %c0_22 = arith.constant 0 : index
    %65 = vector.load %arg5[%c4, %c0_22] : memref<5x576xf32, #tpu.memory_space<vmem>>, vector<1x128xf32>
    %66 = vector.broadcast %65 : vector<1x128xf32> to vector<2x128xf32>
    %67 = arith.addf %64, %66 : vector<2x128xf32>
    %c0_23 = arith.constant 0 : index
    %c0_24 = arith.constant 0 : index
    %68 = vector.load %arg6[%c0_23, %c0_24] : memref<2x128xf32, #tpu.memory_space<vmem>>, vector<2x128xf32>
    tpu.vector_store %arg6[%c0_23, %c0_24], %67 {strides = array<i32>} : memref<2x128xf32, #tpu.memory_space<vmem>>, vector<2x128xf32>,
    return
  }
  func.func @transform_0(%arg0: i32) -> (i32, i32) {
    %c0_i32 = arith.constant 0 : i32
    %c0_i32_0 = arith.constant 0 : i32
    return %arg0, %c0_i32 : i32, i32
  }
  func.func @transform_1(%arg0: i32) -> (i32, i32) {
    %c0_i32 = arith.constant 0 : i32
    %c0_i32_0 = arith.constant 0 : i32
    %c0_i32_1 = arith.constant 0 : i32
    return %c0_i32, %c0_i32_0 : i32, i32
  }
  func.func @transform_2(%arg0: i32) -> (i32, i32) {
    %c0_i32 = arith.constant 0 : i32
    %c0_i32_0 = arith.constant 0 : i32
    %c0_i32_1 = arith.constant 0 : i32
    return %c0_i32, %c0_i32_0 : i32, i32
  }
  func.func @transform_3(%arg0: i32) -> (i32, i32) {
    %c0_i32 = arith.constant 0 : i32
    %c0_i32_0 = arith.constant 0 : i32
    %c0_i32_1 = arith.constant 0 : i32
    return %c0_i32, %c0_i32_0 : i32, i32
  }
  func.func @transform_4(%arg0: i32) -> (i32, i32) {
    %c0_i32 = arith.constant 0 : i32
    %c0_i32_0 = arith.constant 0 : i32
    %c0_i32_1 = arith.constant 0 : i32
    return %c0_i32, %c0_i32_0 : i32, i32
  }
  func.func @transform_5(%arg0: i32) -> (i32, i32) {
    %c0_i32 = arith.constant 0 : i32
    %c0_i32_0 = arith.constant 0 : i32
    return %arg0, %c0_i32 : i32, i32
  }
}

</mosaic_0001>

<bundles_post_ra>
// kernel: network_forward.1
= control target key start
LH: loop header
LB: loop body
LE: loop exit
PB: predicated region body
PF: predicated region fallthrough
CT: control target
= control target key end

     0   :  { %v27_v1 = vlaneseq  ;;  %v2236_v2 = vmov 1966171168   ;;  %s2237_s20 = smov 16   ;;  %s2238_s28 = smov 32   ;;  %s2957_s0 = inlined_call_operand.vmem [shape: bf16[2,784], index: 0, kind: input, shape index: {}]   ;;  %s2958_s1 = inlined_call_operand.vmem [shape: bf16[224,576], index: 1, kind: input, shape index: {}]   ;;  %s2959_s2 = inlined_call_operand.vmem [shape: bf16[432,192], index: 2, kind: input, shape index: {}]   ;;  %s2960_s3 = inlined_call_operand.vmem [shape: bf16[448,128], index: 3, kind: input, shape index: {}]   ;;  %s2961_s4 = inlined_call_operand.vmem [shape: f32[5,576], index: 4, kind: input, shape index: {}]   ;;  %s2962_s5 = inlined_call_operand.hbm [shape: f32[2,128], index: 5, kind: output, shape index: {}]  }
   0x1   :  { %v22_v0 = vld [vmem:[%s2957_s0] sm:$0x7f]  ;;  %v25_v3 = vunpack.c.l.s4 %v2236_v2  ;;  %v2010_v10 = vld [vmem:[%s2958_s1 + $0x8] ss:$20 sps:$4 sm:$0xff]   ;;  %v2022_v23 = vld [vmem:[%s2958_s1 + $0x58] ss:$20 sps:$4 sm:$0xff]  }
   0x2   :  { %v2005_v4 = vld [vmem:[%s2958_s1 + $0x4] ss:$20 sps:$4 sm:$0xff]   ;;  %v2284_v5 = vshrl.u32 %v27_v1, 7  ;;  %v2007_v6 = vld [vmem:[%s2958_s1] ss:$20 sps:$4 sm:$0xff]   ;;  %v46_v8 = vcombine.low %v22_v0, %v22_v0  ;;  %v116_v28 = vcombine.high %v22_v0, %v22_v0  ;;  %s2239_s12 = smov 48  }
   0x3   :  { %v26_v7 = vunpack.c.0.s8 %v25_v3  ;;  %669 = vmatprep.subr.bf16.mxu0 %v2005_v4  ;;  %v2008_v9 = vld [vmem:[%s2958_s1 + $0xc] ss:$20 sps:$4 sm:$0xff]   ;;  %v2013_v12 = vld [vmem:[%s2958_s1 + $0x28] ss:$20 sps:$4 sm:$0xff]   ;;  %v2016_v15 = vld [vmem:[%s2958_s1 + $0x30] ss:$20 sps:$4 sm:$0xff]  }
   0x4   :  { %670 = vmatpush1.bf16.msra.mxu0 %v2007_v6  ;;  %v2011_v11 = vld [vmem:[%s2958_s1 + $0x2c] ss:$20 sps:$4 sm:$0xff]   ;;  %712 = vmatprep.subr.bf16.mxu1 %v2008_v9  ;;  %v2014_v14 = vld [vmem:[%s2958_s1 + $0x34] ss:$20 sps:$4 sm:$0xff]   ;;  %v2019_v19 = vld [vmem:[%s2958_s1 + $0x50] ss:$20 sps:$4 sm:$0xff]  }
   0x5   :  { %v2302_v13 = vsub.s32 %v26_v7, %v2284_v5  ;;  %713 = vmatpush1.bf16.msra.mxu1 %v2010_v10  ;;  %671 = vmatprep.subr.bf16.mxu0 %v2011_v11  ;;  %v2017_v18 = vld [vmem:[%s2958_s1 + $0x54] ss:$20 sps:$4 sm:$0xff]   ;;  %v2020_v20 = vld [vmem:[%s2958_s1 + $0x5c] ss:$20 sps:$4 sm:$0xff]   ;;  %v2026_v29 = vld [vmem:[%s2958_s1 + $0x84] ss:$20 sps:$4 sm:$0xff]  }
   0x6   :  { %714 = vmatprep.subr.bf16.mxu1 %v2014_v14  ;;  %v2023_v24 = vld [vmem:[%s2958_s1 + $0x7c] ss:$20 sps:$4 sm:$0xff]   ;;  %v2025_v30 = vld [vmem:[%s2958_s1 + $0x78] ss:$20 sps:$4 sm:$0xff]   ;;  %v2028_v33 = vld [vmem:[%s2958_s1 + $0x80] ss:$20 sps:$4 sm:$0xff]  }
   0x7   :  { %v53_v16 = vrot.slane %v46_v8, %v2302_v13  ;;  %v2312_v17 = vrot.slane %v22_v0, %v2302_v13  ;;  %v2029_v32 = vld [vmem:[%s2958_s1 + $0xa4] ss:$20 sps:$4 sm:$0xff]   ;;  %v123_v35 = vrot.slane %v116_v28, %v2302_v13  ;;  %v2032_v36 = vld [vmem:[%s2958_s1 + $0xac] ss:$20 sps:$4 sm:$0xff]   ;;  %v2034_v41 = vld [vmem:[%s2958_s1 + $0xa8] ss:$20 sps:$4 sm:$0xff]  }
   0x8   :  { %672 = vmatpush1.bf16.msra.mxu0 %v2013_v12  ;;  %v2031_v37 = vld [vmem:[%s2958_s1 + $0xa0] ss:$20 sps:$4 sm:$0xff]   ;;  %v2037_v45 = vld [vmem:[%s2958_s1 + $0xc8] ss:$20 sps:$4 sm:$0xff]   ;;  %v2040_v49 = vld [vmem:[%s2958_s1 + $0xd0] ss:$20 sps:$4 sm:$0xff]  }
   0x9   :  { %v61_v21 = vrot.slane %v53_v16, %v2302_v13  ;;  %v54_v22 = vcombine.high %v53_v16, %v53_v16  ;;  %673 = vmatprep.subr.bf16.mxu0 %v2017_v18  ;;  %715 = vmatpush1.bf16.msra.mxu1 %v2016_v15  ;;  %v2334_v26 = vrot.slane %v2312_v17, %v2302_v13  ;;  %v2035_v40 = vld [vmem:[%s2958_s1 + $0xcc] ss:$20 sps:$4 sm:$0xff]   ;;  %v2038_v44 = vld [vmem:[%s2958_s1 + $0xd4] ss:$20 sps:$4 sm:$0xff]   ;;  %v2044_v52 = vld [vmem:[%s2958_s1 + $0xfc] ss:$20 sps:$4 sm:$0xff]  }
   0xa   :  { %v79_v27 = vcombine.low %v2312_v17, %v2312_v17  ;;  %716 = vmatprep.subr.bf16.mxu1 %v2020_v20  ;;  %v98_v39 = vcombine.low %v53_v16, %v53_v16  ;;  %v131_v43 = vrot.slane %v123_v35, %v2302_v13  ;;  %v124_v47 = vcombine.high %v123_v35, %v123_v35  ;;  %v2041_v48 = vld [vmem:[%s2958_s1 + $0xf4] ss:$20 sps:$4 sm:$0xff]   ;;  %v2043_v53 = vld [vmem:[%s2958_s1 + $0xf0] ss:$20 sps:$4 sm:$0xff]   ;;  %v2046_v57 = vld [vmem:[%s2958_s1 + $0xf8] ss:$20 sps:$4 sm:$0xff]  }
   0xb   :  { %70 = vrot.lane.b32.xlu1 %v61_v21, %s2237_s20  ;;  %v68_v25 = vrot.slane %v54_v22, %v2302_v13  ;;  %v69_v31 = vcombine.high %v61_v21, %v61_v21  ;;  %v88_v38 = vcombine.high %v2334_v26, %v2334_v26  ;;  %v31_v51 = vcombine.high %v2312_v17, %v2312_v17  ;;  %v2047_v56 = vld [vmem:[%s2958_s1 + $0x11c] ss:$20 sps:$4 sm:$0xff]   ;;  %s2240_s30 = smov 64   ;;  %v2050_v59 = vld [vmem:[%s2958_s1 + $0x124] ss:$20 sps:$4 sm:$0xff]   ;;  %s2241_s24 = smov 80  }
   0xc   :  { %674 = vmatpush1.bf16.msra.mxu0 %v2019_v19  ;;  %v86_v34 = vrot.slane %v79_v27, %v2302_v13  ;;  %v105_v46 = vrot.slane %v98_v39, %v2302_v13  ;;  %v139_v50 = vcombine.low %v131_v43, %v131_v43  ;;  %v138_v55 = vrot.slane %v124_v47, %v2302_v13  ;;  %v2049_v60 = vld [vmem:[%s2958_s1 + $0x118] ss:$20 sps:$4 sm:$0xff]   ;;  %v2052_v63 = vld [vmem:[%s2958_s1 + $0x120] ss:$20 sps:$4 sm:$0xff]   ;;  %v2058_v4 = vld [vmem:[%s2958_s1 + $0x148] ss:$20 sps:$4 sm:$0xff]  }
   0xd   :  { %72 = vrot.lane.b32.xlu0 %v68_v25, %s2237_s20  ;;  %717 = vmatpush1.bf16.msra.mxu1 %v2022_v23  ;;  %v2404_v58 = vrot.slane %v31_v51, %v2302_v13  ;;  %v2053_v62 = vld [vmem:[%s2958_s1 + $0x144] ss:$20 sps:$4 sm:$0xff]   ;;  %v2056_v0 = vld [vmem:[%s2958_s1 + $0x14c] ss:$20 sps:$4 sm:$0xff]   ;;  %v2062_v6 = vld [vmem:[%s2958_s1 + $0x174] ss:$20 sps:$4 sm:$0xff]   ;;  %v150_v9 = vcombine.low %v2334_v26, %v2334_v26 }
   0xe   :  { %675 = vmatprep.subr.bf16.mxu0 %v2023_v24  ;;  %718 = vmatprep.subr.bf16.mxu1 %v2026_v29  ;;  %v87_v42 = vcombine.high %v86_v34, %v86_v34  ;;  %v106_v54 = vcombine.high %v105_v46, %v105_v46  ;;  %v140_v61 = vcombine.low %v138_v55, %v138_v55  ;;  %v2055_v1 = vld [vmem:[%s2958_s1 + $0x140] ss:$20 sps:$4 sm:$0xff]   ;;  %v2061_v7 = vld [vmem:[%s2958_s1 + $0x168] ss:$20 sps:$4 sm:$0xff]   ;;  %v2064_v8 = vld [vmem:[%s2958_s1 + $0x170] ss:$20 sps:$4 sm:$0xff]  }
   0xf   :  { %89 = vrot.lane.b32.xlu1 %v2334_v26, %s2238_s28  ;;  %v151_v2 = vcombine.low %v2404_v58, %v2404_v58  ;;  %v2059_v3 = vld [vmem:[%s2958_s1 + $0x16c] ss:$20 sps:$4 sm:$0xff]   ;;  %v2065_v10 = vld [vmem:[%s2958_s1 + $0x194] ss:$20 sps:$4 sm:$0xff]   ;;  %v2067_v11 = vld [vmem:[%s2958_s1 + $0x190] ss:$20 sps:$4 sm:$0xff]  }
  0x10   :  { %676 = vmatpush1.bf16.msra.mxu0 %v2025_v30  ;;  %v2068_v12 = vld [vmem:[%s2958_s1 + $0x19c] ss:$20 sps:$4 sm:$0xff]   ;;  %v2070_v13 = vld [vmem:[%s2958_s1 + $0x198] ss:$20 sps:$4 sm:$0xff]   ;;  %v2076_v17 = vld [vmem:[%s2958_s1 + $0x1c0] ss:$20 sps:$4 sm:$0xff]  }
  0x11   :  { %74 = vrot.lane.b32.xlu0 %v69_v31, %s2237_s20  ;;  %677 = vmatprep.subr.bf16.mxu0 %v2029_v32  ;;  %v2071_v14 = vld [vmem:[%s2958_s1 + $0x1bc] ss:$20 sps:$4 sm:$0xff]   ;;  %v2073_v15 = vld [vmem:[%s2958_s1 + $0x1b8] ss:$20 sps:$4 sm:$0xff]   ;;  %v2079_v20 = vld [vmem:[%s2958_s1 + $0x1e0] ss:$20 sps:$4 sm:$0xff]  }
  0x12   :  { %719 = vmatpush1.bf16.msra.mxu1 %v2028_v33  ;;  %v2074_v16 = vld [vmem:[%s2958_s1 + $0x1c4] ss:$20 sps:$4 sm:$0xff]   ;;  %v2080_v19 = vld [vmem:[%s2958_s1 + $0x1ec] ss:$20 sps:$4 sm:$0xff]   ;;  %v2082_v21 = vld [vmem:[%s2958_s1 + $0x1e8] ss:$20 sps:$4 sm:$0xff]  }
  0x13   :  { %111 = vrot.lane.b32.xlu1 %v86_v34, %s2239_s12  ;;  %720 = vmatprep.subr.bf16.mxu1 %v2032_v36  ;;  %v2077_v18 = vld [vmem:[%s2958_s1 + $0x1e4] ss:$20 sps:$4 sm:$0xff]   ;;  %v2083_v22 = vld [vmem:[%s2958_s1 + $0x20c] ss:$20 sps:$4 sm:$0xff]   ;;  %v2086_v23 = vld [vmem:[%s2958_s1 + $0x214] ss:$20 sps:$4 sm:$0xff]  }
  0x14   :  { %678 = vmatpush1.bf16.msra.mxu0 %v2031_v37  ;;  %v2085_v24 = vld [vmem:[%s2958_s1 + $0x208] ss:$20 sps:$4 sm:$0xff]   ;;  %v2088_v25 = vld [vmem:[%s2958_s1 + $0x210] ss:$20 sps:$4 sm:$0xff]   ;;  %v2242_v27 = vmov 0  }
  0x15   :  { %93 = vrot.lane.b32.xlu0 %v88_v38, %s2238_s28  ;;  %679 = vmatprep.subr.bf16.mxu0 %v2035_v40 }
  0x16   :  { %721 = vmatpush1.bf16.msra.mxu1 %v2034_v41 }
  0x17   :  { %91 = vrot.lane.b32.xlu1 %v87_v42, %s2238_s28  ;;  %722 = vmatprep.subr.bf16.mxu1 %v2038_v44 }
  0x18   :  { %680 = vmatpush1.bf16.msra.mxu0 %v2037_v45 }
  0x19   :  { %109 = vrot.lane.b32.xlu0 %v69_v31, %s2239_s12  ;;  %681 = vmatprep.subr.bf16.mxu0 %v2041_v48 }
  0x1a   :  { %723 = vmatpush1.bf16.msra.mxu1 %v2040_v49 }
  0x1b   :  { %143 = vrot.lane.b32.xlu1 %v139_v50, %s2240_s30  ;;  %724 = vmatprep.subr.bf16.mxu1 %v2044_v52 }
  0x1c   :  { %682 = vmatpush1.bf16.msra.mxu0 %v2043_v53 }
  0x1d   :  { %107 = vrot.lane.b32.xlu0 %v106_v54, %s2239_s12  ;;  %683 = vmatprep.subr.bf16.mxu0 %v2047_v56 }
  0x1e   :  { %725 = vmatpush1.bf16.msra.mxu1 %v2046_v57 }
  0x1f   :  { %141 = vrot.lane.b32.xlu1 %v2404_v58, %s2240_s30  ;;  %726 = vmatprep.subr.bf16.mxu1 %v2050_v59 }
  0x20   :  { %684 = vmatpush1.bf16.msra.mxu0 %v2049_v60 }
  0x21   :  { %145 = vrot.lane.b32.xlu0 %v140_v61, %s2240_s30  ;;  %685 = vmatprep.subr.bf16.mxu0 %v2053_v62 }
  0x22   :  { %727 = vmatpush1.bf16.msra.mxu1 %v2052_v63 }
  0x23   :  { %156 = vrot.lane.b32.xlu1 %v2334_v26, %s2241_s24  ;;  %728 = vmatprep.subr.bf16.mxu1 %v2056_v0 }
  0x24   :  { %686 = vmatpush1.bf16.msra.mxu0 %v2055_v1 }
  0x25   :  { %154 = vrot.lane.b32.xlu0 %v151_v2, %s2241_s24  ;;  %687 = vmatprep.subr.bf16.mxu0 %v2059_v3 }
  0x26   :  { %729 = vmatpush1.bf16.msra.mxu1 %v2058_v4 }
  0x27   :  { %730 = vmatprep.subr.bf16.mxu1 %v2062_v6 }
  0x28   :  { %688 = vmatpush1.bf16.msra.mxu0 %v2061_v7 }
  0x29   :  { %152 = vrot.lane.b32.xlu0 %v150_v9, %s2241_s24  ;;  %689 = vmatprep.subr.bf16.mxu0 %v2065_v10 }
  0x2a   :  { %731 = vmatpush1.bf16.msra.mxu1 %v2064_v8 }
  0x2b   :  { %732 = vmatprep.subr.bf16.mxu1 %v2068_v12 }
  0x2c   :  { %690 = vmatpush1.bf16.msra.mxu0 %v2067_v11 }
  0x2d   :  { %691 = vmatprep.subr.bf16.mxu0 %v2071_v14 }
  0x2e   :  { %733 = vmatpush1.bf16.msra.mxu1 %v2070_v13 }
  0x2f   :  { %734 = vmatprep.subr.bf16.mxu1 %v2074_v16 }
  0x30   :  { %692 = vmatpush1.bf16.msra.mxu0 %v2073_v15 }
  0x31   :  { %693 = vmatprep.subr.bf16.mxu0 %v2077_v18 }
  0x32   :  { %735 = vmatpush1.bf16.msra.mxu1 %v2076_v17 }
  0x33   :  { %736 = vmatprep.subr.bf16.mxu1 %v2080_v19 }
  0x34   :  { %694 = vmatpush1.bf16.msra.mxu0 %v2079_v20 }
  0x35   :  { %695 = vmatprep.subr.bf16.mxu0 %v2083_v22 }
  0x36   :  { %737 = vmatpush1.bf16.msra.mxu1 %v2082_v21 }
  0x37   :  { %738 = vmatprep.subr.bf16.mxu1 %v2086_v23 }
  0x38   :  { %696 = vmatpush1.bf16.msra.mxu0 %v2085_v24 }
  0x39   :  { %755 = vmatprep.subr.bf16.mxu0 %v2242_v27 }
  0x3a   :  { %739 = vmatpush1.bf16.msra.mxu1 %v2088_v25 }
  0x3b   :  { %10 = vsyncpa [#allocation3], 0  ;;  %vm95_vm0 = vcmask 261120   ;;  %vm76_vm1 = vcmask 130048   ;;  %vm168_vm2 = vcmask 1041408   ;;  %vm113_vm3 = vcmask 392192  }
  0x3c   :  { %vm161_vm4 = vcmask 1040384   ;;  %vm173_vm5 = vcmask 1042432   ;;  %vm147_vm6 = vcmask 523264   ;;  %vm158_vm7 = vcmask 654336   ;;  %v2089_v59 = vld [vmem:[%s2958_s1 + $0x10] ss:$20 sps:$4 sm:$0xff]  }
  0x3d   :  { %vm183_vm8 = vcmask 1044480   ;;  %vm178_vm9 = vcmask 1043456   ;;  %vm666_vm10 = vcmask 785408   ;;  %v2090_v63 = vld [vmem:[%s2958_s1 + $0x38] ss:$20 sps:$4 sm:$0xff]   ;;  %v291_v24 = vsub.s32 3, %v2284_v5 }
  0x3e   :  { %v2091_v0 = vld [vmem:[%s2958_s1 + $0x60] ss:$20 sps:$4 sm:$0xff]   ;;  %v2092_v1 = vld [vmem:[%s2958_s1 + $0x88] ss:$20 sps:$4 sm:$0xff]   ;;  %v2093_v2 = vld [vmem:[%s2958_s1 + $0xb0] ss:$20 sps:$4 sm:$0xff]  }
  0x3f   :  { %v2094_v3 = vld [vmem:[%s2958_s1 + $0xd8] ss:$20 sps:$4 sm:$0xff]   ;;  %v2095_v4 = vld [vmem:[%s2958_s1 + $0x100] ss:$20 sps:$4 sm:$0xff]   ;;  %v2096_v6 = vld [vmem:[%s2958_s1 + $0x128] ss:$20 sps:$4 sm:$0xff]  }
  0x40   :  { %v2097_v7 = vld [vmem:[%s2958_s1 + $0x150] ss:$20 sps:$4 sm:$0xff]   ;;  %v2098_v8 = vld [vmem:[%s2958_s1 + $0x178] ss:$20 sps:$4 sm:$0xff]   ;;  %v2099_v9 = vld [vmem:[%s2958_s1 + $0x1a0] ss:$20 sps:$4 sm:$0xff]  }
  0x41   :  { %v2100_v10 = vld [vmem:[%s2958_s1 + $0x1c8] ss:$20 sps:$4 sm:$0xff]   ;;  %v2101_v11 = vld [vmem:[%s2958_s1 + $0x1f0] ss:$20 sps:$4 sm:$0xff]   ;;  %v2102_v12 = vld [vmem:[%s2958_s1 + $0x218] ss:$20 sps:$4 sm:$0xff]  }
  0x42   :  { %v273_v21 = vld [vmem:[%s2961_s4] ss:$8 sm:$0xf]  ;;  %v287_v25 = vsub.s32 2, %v2284_v5  ;;  %s2243_s27 = smov 112   ;;  %vm818_vm11 = vcmask 916480  }
  0x43   :  { %v274_v22 = vld [vmem:[%s2961_s4] ss:$8 sm:$0x10]  ;;  %s2244_s29 = smov 96   ;;  %vm2246_vm12 = vmmov 0  }
  0x44   :  { %v275_v23 = vor.u32 %v274_v22, %v273_v21 }
  0x7d   :  { %v71_v28 = vpop.permute.xlu1 %70 }
  0x7f   :  { %v73_v29 = vpop.permute.xlu0 %72 }
  0x80   :  { %v77_v43 = vsel %vm76_vm1, %v71_v28, %v73_v29  ;;  %v283_v28 = vsub.s32 1, %v2284_v5 }
  0x81   :  { %v90_v30 = vpop.permute.xlu1 %89  ;;  %v164_v50 = vsel %vm161_vm4, %v2334_v26, %v77_v43 }
  0x83   :  { %v75_v31 = vpop.permute.xlu0 %74 }
  0x84   :  { %v78_v38 = vsel %vm76_vm1, %v73_v29, %v75_v31  ;;  %v295_v29 = vsub.s32 4, %v2284_v5  ;;  %v288_v31 = vrot.slane %v275_v23, %v287_v25  ;;  %v2105_v25 = vld [vmem:[%s2959_s2 + $0x4] ss:$8 sps:$4 sm:$0xff]  }
  0x85   :  { %v112_v32 = vpop.permute.xlu1 %111  ;;  %v167_v41 = vsel %vm161_vm4, %v2404_v58, %v78_v38  ;;  %1242 = vmatprep.subr.bf16.mxu1 %v2105_v25 }
  0x87   :  { %v94_v33 = vpop.permute.xlu0 %93 }
  0x89   :  { %v92_v34 = vpop.permute.xlu1 %91 }
  0x8a   :  { %v97_v39 = vsel %vm95_vm0, %v92_v34, %v94_v33  ;;  %v96_v46 = vsel %vm95_vm0, %v90_v30, %v92_v34  ;;  %v292_v30 = vrot.slane %v275_v23, %v291_v24  ;;  %v296_v33 = vrot.slane %v275_v23, %v295_v29  ;;  %v2103_v24 = vld [vmem:[%s2959_s2] ss:$8 sps:$4 sm:$0xff]   ;;  %v2108_v29 = vld [vmem:[%s2959_s2 + $0x14] ss:$8 sps:$4 sm:$0xff]  }
  0x8b   :  { %v110_v35 = vpop.permute.xlu0 %109  ;;  %v172_v44 = vsel %vm168_vm2, %v167_v41, %v97_v39  ;;  %v170_v53 = vsel %vm168_vm2, %v164_v50, %v96_v46 }
  0x8c   :  { %v115_v45 = vsel %vm113_vm3, %v110_v35, %v112_v32  ;;  %v284_v32 = vrot.slane %v275_v23, %v283_v28 }
  0x8d   :  { %v144_v36 = vpop.permute.xlu1 %143  ;;  %v177_v51 = vsel %vm173_vm5, %v172_v44, %v115_v45 }
  0x8f   :  { %v108_v37 = vpop.permute.xlu0 %107 }
  0x90   :  { %v114_v49 = vsel %vm113_vm3, %v108_v37, %v110_v35 }
  0x91   :  { %v142_v40 = vpop.permute.xlu1 %141  ;;  %v175_v56 = vsel %vm173_vm5, %v170_v53, %v114_v49 }
  0x92   :  { %v148_v57 = vsel %vm147_vm6, %v142_v40, %v144_v36 }
  0x93   :  { %v146_v42 = vpop.permute.xlu0 %145  ;;  %v180_v61 = vsel %vm178_vm9, %v175_v56, %v148_v57 }
  0x94   :  { %v149_v47 = vsel %vm147_vm6, %v144_v36, %v146_v42 }
  0x95   :  { %v157_v48 = vpop.permute.xlu1 %156  ;;  %v182_v55 = vsel %vm178_vm9, %v177_v51, %v149_v47 }
  0x97   :  { %v155_v52 = vpop.permute.xlu0 %154 }
  0x98   :  { %v160_v54 = vsel %vm158_vm7, %v155_v52, %v157_v48 }
  0x99   :  { %v188_v58 = vsel %vm183_vm8, %v182_v55, %v160_v54 }
  0x9a   :  { %1804 = vmatprep.mubr.msk.bf16.mxu0 %vm666_vm10, %v188_v58  ;;  %1805 = vmatprep.mubr.msk.bf16.mxu1 %vm666_vm10, %v188_v58 }
  0x9b   :  { %v153_v26 = vpop.permute.xlu0 %152 }
  0x9c   :  { %v159_v60 = vsel %vm158_vm7, %v153_v26, %v155_v52 }
  0x9d   :  { %v185_v62 = vsel %vm183_vm8, %v180_v61, %v159_v60 }
  0x9e   :  { %702 = vmatmul.mubr.bf16.vlgmr.msra.gmra.mrb[0].mxu0 %v185_v62  ;;  %745 = vmatmul.mubr.bf16.vlgmr.msra.gmra.mrb[0].mxu1 %v185_v62 }
  0x9f   :  { %756 = vmatpush1.bf16.msra.mxu0 %v2089_v59  ;;  %1806 = vmatprep.mubr.msk.bf16.mxu0 %vm666_vm10, %v188_v58  ;;  %v279_v58 = vsub.s32 0, %v2284_v5  ;;  %v2184_v5 = vld [vmem:[%s2960_s3] sm:$0xff]  }
  0xa0   :  { %757 = vmatprep.subr.bf16.mxu0 %v2242_v27  ;;  %1243 = vmatpush1.bf16.msra.mxu1 %v2103_v24  ;;  %v2154_v24 = vld [vmem:[%s2959_s2 + $0x110] ss:$8 sps:$4 sm:$0xff]  }
  0xa1   :  { %v280_v26 = vrot.slane %v275_v23, %v279_v58  ;;  %1244 = vmatprep.subr.bf16.mxu1 %v2108_v29  ;;  %v2159_v29 = vld [vmem:[%s2959_s2 + $0x124] ss:$8 sps:$4 sm:$0xff]  }
  0xa3   :  { %758 = vmatpush1.bf16.msra.mxu0 %v2090_v63 }
  0xa4   :  { %759 = vmatprep.subr.bf16.mxu0 %v2242_v27 }
  0xa7   :  { %760 = vmatpush1.bf16.msra.mxu0 %v2091_v0 }
  0xa8   :  { %761 = vmatprep.subr.bf16.mxu0 %v2242_v27 }
  0xab   :  { %762 = vmatpush1.bf16.msra.mxu0 %v2092_v1 }
  0xac   :  { %763 = vmatprep.subr.bf16.mxu0 %v2242_v27 }
  0xaf   :  { %764 = vmatpush1.bf16.msra.mxu0 %v2093_v2 }
  0xb0   :  { %765 = vmatprep.subr.bf16.mxu0 %v2242_v27 }
  0xb3   :  { %766 = vmatpush1.bf16.msra.mxu0 %v2094_v3 }
  0xb4   :  { %767 = vmatprep.subr.bf16.mxu0 %v2242_v27 }
  0xb7   :  { %768 = vmatpush1.bf16.msra.mxu0 %v2095_v4 }
  0xb8   :  { %769 = vmatprep.subr.bf16.mxu0 %v2242_v27 }
  0xbb   :  { %770 = vmatpush1.bf16.msra.mxu0 %v2096_v6 }
  0xbc   :  { %771 = vmatprep.subr.bf16.mxu0 %v2242_v27 }
  0xbf   :  { %772 = vmatpush1.bf16.msra.mxu0 %v2097_v7 }
  0xc0   :  { %773 = vmatprep.subr.bf16.mxu0 %v2242_v27 }
  0xc3   :  { %774 = vmatpush1.bf16.msra.mxu0 %v2098_v8 }
  0xc4   :  { %775 = vmatprep.subr.bf16.mxu0 %v2242_v27 }
  0xc7   :  { %776 = vmatpush1.bf16.msra.mxu0 %v2099_v9 }
  0xc8   :  { %777 = vmatprep.subr.bf16.mxu0 %v2242_v27 }
  0xcb   :  { %778 = vmatpush1.bf16.msra.mxu0 %v2100_v10 }
  0xcc   :  { %779 = vmatprep.subr.bf16.mxu0 %v2242_v27 }
  0xcf   :  { %780 = vmatpush1.bf16.msra.mxu0 %v2101_v11 }
  0xd0   :  { %781 = vmatprep.subr.bf16.mxu0 %v2242_v27 }
  0xd3   :  { %782 = vmatpush1.bf16.msra.mxu0 %v2102_v12 }
  0xd4   :  { %1465 = vmatprep.subr.bf16.mxu0 %v2242_v27 }
  0xd6   :  { %788 = vmatmul.mubr.bf16.vlgmr.msra.gmra.mrb[4].mxu0 %v185_v62 }
  0xd7   :  { %1466 = vmatpush1.bf16.msra.mxu0 %v2184_v5 }
  0xd8   :  { %1467 = vmatprep.subr.bf16.mxu0 %v2242_v27 }
 0x171   :  { %v703_v13 = vpop.f32.mrb[0].mxu0  ;;  %v746_v14 = vpop.f32.mrb[0].mxu1 }
 0x172   :  { %v705_v15 = vpop.f32.mrb[1].mxu0  ;;  %v748_v16 = vpop.f32.mrb[1].mxu1  ;;  %v747_v35 = vadd.f32 %v746_v14, %v288_v31  ;;  %v704_v62 = vadd.f32 %v703_v13, %v280_v26 }
 0x173   :  { %v707_v17 = vpop.f32.mrb[2].mxu0  ;;  %v750_v18 = vpop.f32.mrb[2].mxu1  ;;  %v749_v34 = vadd.f32 %v748_v16, %v292_v30  ;;  %v2587_v37 = vadd.f32 %v705_v15, %v284_v32 }
 0x174   :  { %v709_v19 = vpop.f32.mrb[3].mxu0  ;;  %v752_v20 = vpop.f32.mrb[3].mxu1  ;;  %v751_v41 = vadd.f32 %v750_v18, %v288_v31  ;;  %v798_v48 = vmax.f32 %v747_v35, 0.0  ;;  %v708_v4 = vadd.f32 %v707_v17, %v280_v26  ;;  %v796_v12 = vmax.f32 %v704_v62, 0.0  ;;  %v2111_v31 = vld [vmem:[%s2959_s2 + $0x24] ss:$8 sps:$4 sm:$0xff]  }
 0x175   :  { %v753_v38 = vadd.f32 %v752_v20, %v292_v30  ;;  %v799_v43 = vmax.f32 %v749_v34, 0.0  ;;  %v2589_v44 = vadd.f32 %v709_v19, %v284_v32  ;;  %v797_v49 = vmax.f32 %v2587_v37, 0.0  ;;  %v2106_v30 = vld [vmem:[%s2959_s2 + $0x10] ss:$8 sps:$4 sm:$0xff]   ;;  %v2109_v32 = vld [vmem:[%s2959_s2 + $0x20] ss:$8 sps:$4 sm:$0xff]  }
 0x176   :  { %v803_v53 = vmax.f32 %v751_v41, 0.0  ;;  %v801_v19 = vmax.f32 %v708_v4, 0.0  ;;  %1245 = vmatpush1.bf16.msra.mxu1 %v2106_v30  ;;  %v2112_v34 = vld [vmem:[%s2959_s2 + $0x30] ss:$8 sps:$4 sm:$0xff]   ;;  %v2117_v35 = vld [vmem:[%s2959_s2 + $0x44] ss:$8 sps:$4 sm:$0xff]  }
 0x177   :  { %v804_v50 = vmax.f32 %v753_v38, 0.0  ;;  %v802_v54 = vmax.f32 %v2589_v44, 0.0  ;;  %v1978_v56 = vpack.i.bf16 %v798_v48, %v797_v49  ;;  %1246 = vmatprep.subr.bf16.mxu1 %v2111_v31  ;;  %v2120_v38 = vld [vmem:[%s2959_s2 + $0x54] ss:$8 sps:$4 sm:$0xff]   ;;  %v2121_v41 = vld [vmem:[%s2959_s2 + $0x60] ss:$8 sps:$4 sm:$0xff]  }
 0x178   :  { %v2142_v26 = vld [vmem:[%s2959_s2 + $0xd0] ss:$8 sps:$4 sm:$0xff]   ;;  %v2157_v30 = vld [vmem:[%s2959_s2 + $0x120] ss:$8 sps:$4 sm:$0xff]   ;;  %v2162_v31 = vld [vmem:[%s2959_s2 + $0x134] ss:$8 sps:$4 sm:$0xff]  }
 0x179   :  { %v1983_v57 = vpack.i.bf16 %v803_v53, %v802_v54  ;;  %v2148_v62 = vld [vmem:[%s2959_s2 + $0xf0] ss:$8 sps:$4 sm:$0xff]  }
 0x17a   :  { %1247 = vmatpush1.bf16.msra.mxu1 %v2109_v32  ;;  %v2160_v32 = vld [vmem:[%s2959_s2 + $0x130] ss:$8 sps:$4 sm:$0xff]  }
 0x1a9   :  { %v789_v36 = vpop.f32.mrb[4].mxu0 }
 0x1aa   :  { %v790_v39 = vadd.f32 %v789_v36, %v296_v33  ;;  %v791_v40 = vpop.f32.mrb[5].mxu0  ;;  %v2115_v36 = vld [vmem:[%s2959_s2 + $0x40] ss:$8 sps:$4 sm:$0xff]  }
 0x1ab   :  { %v792_v42 = vpop.f32.mrb[6].mxu0  ;;  %v2123_v40 = vld [vmem:[%s2959_s2 + $0x64] ss:$8 sps:$4 sm:$0xff]  }
 0x1ac   :  { %v800_v45 = vmax.f32 %v790_v39, 0.0  ;;  %v793_v46 = vadd.f32 %v792_v42, %v296_v33  ;;  %v794_v47 = vpop.f32.mrb[7].mxu0  ;;  %v2114_v33 = vld [vmem:[%s2959_s2 + $0x34] ss:$8 sps:$4 sm:$0xff]   ;;  %v2118_v39 = vld [vmem:[%s2959_s2 + $0x50] ss:$8 sps:$4 sm:$0xff]  }
 0x1ad   :  { %1248 = vmatprep.subr.bf16.mxu1 %v2114_v33  ;;  %v2126_v42 = vld [vmem:[%s2959_s2 + $0x74] ss:$8 sps:$4 sm:$0xff]   ;;  %v2165_v33 = vld [vmem:[%s2959_s2 + $0x144] ss:$8 sps:$4 sm:$0xff]  }
 0x1ae   :  { %v1968_v51 = vpack.i.bf16 %v800_v45, %v799_v43  ;;  %v805_v52 = vmax.f32 %v793_v46, 0.0  ;;  %1249 = vmatpush1.bf16.msra.mxu1 %v2112_v34  ;;  %v2129_v45 = vld [vmem:[%s2959_s2 + $0x84] ss:$8 sps:$4 sm:$0xff]   ;;  %v2127_v46 = vld [vmem:[%s2959_s2 + $0x80] ss:$8 sps:$4 sm:$0xff]  }
 0x1af   :  { %1250 = vmatprep.subr.bf16.mxu1 %v2117_v35  ;;  %v2132_v47 = vld [vmem:[%s2959_s2 + $0x94] ss:$8 sps:$4 sm:$0xff]   ;;  %v2163_v34 = vld [vmem:[%s2959_s2 + $0x140] ss:$8 sps:$4 sm:$0xff]  }
 0x1b0   :  { %v1973_v55 = vpack.i.bf16 %v805_v52, %v804_v50  ;;  %1969 = vrot.lane.b32.xlu1 %v1968_v51, %s2243_s27  ;;  %v2133_v51 = vld [vmem:[%s2959_s2 + $0xa0] ss:$8 sps:$4 sm:$0xff]   ;;  %v2138_v52 = vld [vmem:[%s2959_s2 + $0xb4] ss:$8 sps:$4 sm:$0xff]  }
 0x1b1   :  { %v2168_v35 = vld [vmem:[%s2959_s2 + $0x154] ss:$8 sps:$4 sm:$0xff]  }
 0x1b2   :  { %1974 = vrot.lane.b32.xlu0 %v1973_v55, %s2243_s27  ;;  %1251 = vmatpush1.bf16.msra.mxu1 %v2115_v36  ;;  %v2141_v55 = vld [vmem:[%s2959_s2 + $0xc4] ss:$8 sps:$4 sm:$0xff]   ;;  %v2166_v36 = vld [vmem:[%s2959_s2 + $0x150] ss:$8 sps:$4 sm:$0xff]  }
 0x1b3   :  { %1252 = vmatprep.subr.bf16.mxu1 %v2120_v38  ;;  %v2171_v38 = vld [vmem:[%s2959_s2 + $0x164] ss:$8 sps:$4 sm:$0xff]  }
 0x1b4   :  { %1979 = vrot.lane.b32.xlu1 %v1978_v56, %s2243_s27  ;;  %v2139_v56 = vld [vmem:[%s2959_s2 + $0xc0] ss:$8 sps:$4 sm:$0xff]  }
 0x1b6   :  { %1984 = vrot.lane.b32.xlu0 %v1983_v57, %s2243_s27  ;;  %1253 = vmatpush1.bf16.msra.mxu1 %v2118_v39  ;;  %v2144_v57 = vld [vmem:[%s2959_s2 + $0xd4] ss:$8 sps:$4 sm:$0xff]   ;;  %v2169_v39 = vld [vmem:[%s2959_s2 + $0x160] ss:$8 sps:$4 sm:$0xff]  }
 0x1b7   :  { %1254 = vmatprep.subr.bf16.mxu1 %v2123_v40  ;;  %v2174_v40 = vld [vmem:[%s2959_s2 + $0x174] ss:$8 sps:$4 sm:$0xff]  }
 0x1ba   :  { %1255 = vmatpush1.bf16.msra.mxu1 %v2121_v41  ;;  %v2172_v41 = vld [vmem:[%s2959_s2 + $0x170] ss:$8 sps:$4 sm:$0xff]  }
 0x1bb   :  { %1256 = vmatprep.subr.bf16.mxu1 %v2126_v42  ;;  %v2177_v42 = vld [vmem:[%s2959_s2 + $0x184] ss:$8 sps:$4 sm:$0xff]  }
 0x222   :  { %v1970_v59 = vpop.permute.xlu1 %1969 }
 0x223   :  { %v1972_v60 = vunpack.i.h.bf16 %v1970_v59  ;;  %v1971_v61 = vunpack.i.l.bf16 %v1970_v59  ;;  %v2147_v59 = vld [vmem:[%s2959_s2 + $0xe4] ss:$8 sps:$4 sm:$0xff]  }
 0x224   :  { %v1975_v63 = vpop.permute.xlu0 %1974 }
 0x225   :  { %v848_v0 = vmax.f32 %v799_v43, %v1972_v60  ;;  %v841_v1 = vsel %vm818_vm11, %v1971_v61, %v1972_v60  ;;  %v1977_v2 = vunpack.i.h.bf16 %v1975_v63  ;;  %v1976_v3 = vunpack.i.l.bf16 %v1975_v63  ;;  %v2124_v43 = vld [vmem:[%s2959_s2 + $0x70] ss:$8 sps:$4 sm:$0xff]   ;;  %v2145_v60 = vld [vmem:[%s2959_s2 + $0xe0] ss:$8 sps:$4 sm:$0xff]   ;;  %v2150_v61 = vld [vmem:[%s2959_s2 + $0xf4] ss:$8 sps:$4 sm:$0xff]  }
 0x226   :  { %v2601_v6 = vpop.permute.xlu1 %1979  ;;  %v847_v7 = vmax.f32 %v798_v48, %v841_v1  ;;  %1257 = vmatpush1.bf16.msra.mxu1 %v2124_v43  ;;  %v2130_v48 = vld [vmem:[%s2959_s2 + $0x90] ss:$8 sps:$4 sm:$0xff]   ;;  %v2153_v63 = vld [vmem:[%s2959_s2 + $0x104] ss:$8 sps:$4 sm:$0xff]   ;;  %v2175_v43 = vld [vmem:[%s2959_s2 + $0x180] ss:$8 sps:$4 sm:$0xff]  }
 0x227   :  { %v850_v8 = vmax.f32 %v804_v50, %v1977_v2  ;;  %v842_v9 = vsel %vm818_vm11, %v1976_v3, %v1977_v2  ;;  %v1982_v10 = vunpack.i.h.bf16 %v2601_v6  ;;  %v1981_v11 = vunpack.i.l.bf16 %v2601_v6  ;;  %1258 = vmatprep.subr.bf16.mxu1 %v2129_v45  ;;  %v2135_v50 = vld [vmem:[%s2959_s2 + $0xa4] ss:$8 sps:$4 sm:$0xff]   ;;  %v2180_v45 = vld [vmem:[%s2959_s2 + $0x194] ss:$8 sps:$4 sm:$0xff]  }
 0x228   :  { %v2606_v14 = vpop.permute.xlu0 %1984  ;;  %v1988_v13 = vpack.i.bf16 %v848_v0, %v847_v7  ;;  %v849_v15 = vmax.f32 %v803_v53, %v842_v9  ;;  %v2136_v53 = vld [vmem:[%s2959_s2 + $0xb0] ss:$8 sps:$4 sm:$0xff]  }
 0x229   :  { %v819_v16 = vsel %vm818_vm11, %v1981_v11, %v1982_v10  ;;  %v1987_v17 = vunpack.i.h.bf16 %v2606_v14  ;;  %v1986_v18 = vunpack.i.l.bf16 %v2606_v14  ;;  %v826_v3 = vmax.f32 %v797_v49, %v1982_v10 }
 0x22a   :  { %v2613_v20 = vmax.f32 %v796_v12, %v819_v16  ;;  %1989 = vrot.lane.b32.xlu1 %v1988_v13, %s2244_s29  ;;  %v1993_v21 = vpack.i.bf16 %v850_v8, %v849_v15  ;;  %1259 = vmatpush1.bf16.msra.mxu1 %v2127_v46  ;;  %v2178_v46 = vld [vmem:[%s2959_s2 + $0x190] ss:$8 sps:$4 sm:$0xff]  }
 0x22b   :  { %v820_v22 = vsel %vm818_vm11, %v1986_v18, %v1987_v17  ;;  %1260 = vmatprep.subr.bf16.mxu1 %v2132_v47  ;;  %v828_v7 = vmax.f32 %v802_v54, %v1987_v17  ;;  %v2183_v47 = vld [vmem:[%s2959_s2 + $0x1a4] ss:$8 sps:$4 sm:$0xff]  }
 0x22c   :  { %v2619_v23 = vmax.f32 %v801_v19, %v820_v22  ;;  %1994 = vrot.lane.b32.xlu0 %v1993_v21, %s2244_s29  ;;  %v2151_v19 = vld [vmem:[%s2959_s2 + $0x100] ss:$8 sps:$4 sm:$0xff]   ;;  %v2156_v21 = vld [vmem:[%s2959_s2 + $0x114] ss:$8 sps:$4 sm:$0xff]  }
 0x22e   :  { %1261 = vmatpush1.bf16.msra.mxu1 %v2130_v48  ;;  %v2181_v48 = vld [vmem:[%s2959_s2 + $0x1a0] ss:$8 sps:$4 sm:$0xff]  }
 0x22f   :  { %1262 = vmatprep.subr.bf16.mxu1 %v2135_v50 }
 0x232   :  { %1263 = vmatpush1.bf16.msra.mxu1 %v2133_v51 }
 0x233   :  { %1264 = vmatprep.subr.bf16.mxu1 %v2138_v52  ;;  %v1807_v52 = vld [vmem:[%s2961_s4 + $0x1] ss:$8 sm:$0x3] }
 0x236   :  { %1265 = vmatpush1.bf16.msra.mxu1 %v2136_v53  ;;  %v961_v53 = vrot.slane %v1807_v52, %v279_v58  ;;  %v2186_v58 = vld [vmem:[%s2960_s3 + $0x10] sm:$0xff]  }
 0x237   :  { %1266 = vmatprep.subr.bf16.mxu1 %v2141_v55  ;;  %v965_v55 = vrot.slane %v1807_v52, %v283_v28  ;;  %v2185_v28 = vld [vmem:[%s2960_s3 + $0x8] sm:$0xff]  }
 0x238   :  { %1468 = vmatpush1.bf16.msra.mxu0 %v2185_v28 }
 0x239   :  { %1469 = vmatprep.subr.bf16.mxu0 %v2242_v27 }
 0x23a   :  { %1267 = vmatpush1.bf16.msra.mxu1 %v2139_v56 }
 0x23b   :  { %1268 = vmatprep.subr.bf16.mxu1 %v2144_v57 }
 0x23c   :  { %1470 = vmatpush1.bf16.msra.mxu0 %v2186_v58 }
 0x23d   :  { %1471 = vmatprep.subr.bf16.mxu0 %v2242_v27 }
 0x23e   :  { %1269 = vmatpush1.bf16.msra.mxu1 %v2142_v26 }
 0x23f   :  { %1270 = vmatprep.subr.bf16.mxu1 %v2147_v59 }
 0x242   :  { %1271 = vmatpush1.bf16.msra.mxu1 %v2145_v60 }
 0x243   :  { %1272 = vmatprep.subr.bf16.mxu1 %v2150_v61 }
 0x246   :  { %1273 = vmatpush1.bf16.msra.mxu1 %v2148_v62 }
 0x247   :  { %1283 = vmatprep.subr.bf16.mxu1 %v2153_v63 }
 0x29c   :  { %v1990_v0 = vpop.permute.xlu1 %1989 }
 0x29d   :  { %v1992_v1 = vunpack.i.h.bf16 %v1990_v0  ;;  %v1991_v2 = vunpack.i.l.bf16 %v1990_v0 }
 0x29e   :  { %v1995_v4 = vpop.permute.xlu0 %1994 }
 0x29f   :  { %v863_v8 = vsel %vm666_vm10, %v1991_v2, %v1992_v1  ;;  %v1997_v9 = vunpack.i.h.bf16 %v1995_v4  ;;  %v1996_v11 = vunpack.i.l.bf16 %v1995_v4  ;;  %v870_v12 = vmax.f32 %v826_v3, %v1992_v1  ;;  %v2187_v4 = vld [vmem:[%s2960_s3 + $0x18] sm:$0xff]  }
 0x2a0   :  { %v869_v16 = vmax.f32 %v2613_v20, %v863_v8  ;;  %1472 = vmatpush1.bf16.msra.mxu0 %v2187_v4  ;;  %v2189_v8 = vld [vmem:[%s2960_s3 + $0x28] sm:$0xff]  }
 0x2a1   :  { %v864_v13 = vsel %vm666_vm10, %v1996_v11, %v1997_v9  ;;  %v872_v15 = vmax.f32 %v828_v7, %v1997_v9  ;;  %v2188_v7 = vld [vmem:[%s2960_s3 + $0x20] sm:$0xff]   ;;  %1473 = vmatprep.subr.bf16.mxu0 %v2242_v27  ;;  %v2190_v9 = vld [vmem:[%s2960_s3 + $0x30] sm:$0xff]   ;;  %v2191_v11 = vld [vmem:[%s2960_s3 + $0x38] sm:$0xff]  }
 0x2a2   :  { %v871_v6 = vmax.f32 %v2619_v23, %v864_v13  ;;  %v2193_v13 = vld [vmem:[%s2960_s3 + $0x48] sm:$0xff]  }
 0x2a3   :  { %v874_v37 = vpack.c.bf16 %v872_v15, %v870_v12  ;;  %v2192_v12 = vld [vmem:[%s2960_s3 + $0x40] sm:$0xff]   ;;  %v2194_v15 = vld [vmem:[%s2960_s3 + $0x50] sm:$0xff]  }
 0x2a4   :  { %v873_v49 = vpack.c.bf16 %v871_v6, %v869_v16  ;;  %1474 = vmatpush1.bf16.msra.mxu0 %v2188_v7  ;;  %v2195_v16 = vld [vmem:[%s2960_s3 + $0x58] sm:$0xff]  }
 0x2a5   :  { %v878_v10 = vrot.slane %v874_v37, 1  ;;  %v885_v44 = vrot.slane %v874_v37, 2  ;;  %1475 = vmatprep.subr.bf16.mxu0 %v2242_v27 }
 0x2a6   :  { %v877_v18 = vrot.slane %v873_v49, 1  ;;  %v884_v54 = vrot.slane %v873_v49, 2 }
 0x2a7   :  { %881 = vrot.lane.b32.xlu0 %v878_v10, %s2237_s20 }
 0x2a8   :  { %879 = vrot.lane.b32.xlu1 %v877_v18, %s2237_s20  ;;  %1476 = vmatpush1.bf16.msra.mxu0 %v2189_v8 }
 0x2a9   :  { %1477 = vmatprep.subr.bf16.mxu0 %v2242_v27 }
 0x2ab   :  { %888 = vrot.lane.b32.xlu0 %v885_v44, %s2238_s28 }
 0x2ac   :  { %886 = vrot.lane.b32.xlu1 %v884_v54, %s2238_s28  ;;  %1478 = vmatpush1.bf16.msra.mxu0 %v2190_v9 }
 0x2ad   :  { %1479 = vmatprep.subr.bf16.mxu0 %v2242_v27 }
 0x2b0   :  { %1480 = vmatpush1.bf16.msra.mxu0 %v2191_v11 }
 0x2b1   :  { %1481 = vmatprep.subr.bf16.mxu0 %v2242_v27 }
 0x2b4   :  { %1482 = vmatpush1.bf16.msra.mxu0 %v2192_v12 }
 0x2b5   :  { %1483 = vmatprep.subr.bf16.mxu0 %v2242_v27 }
 0x2b8   :  { %1484 = vmatpush1.bf16.msra.mxu0 %v2193_v13 }
 0x2b9   :  { %1485 = vmatprep.subr.bf16.mxu0 %v2242_v27 }
 0x2bc   :  { %1486 = vmatpush1.bf16.msra.mxu0 %v2194_v15 }
 0x2bd   :  { %1487 = vmatprep.subr.bf16.mxu0 %v2242_v27 }
 0x2c0   :  { %1488 = vmatpush1.bf16.msra.mxu0 %v2195_v16 }
 0x319   :  { %v882_v14 = vpop.permute.xlu0 %881 }
 0x31a   :  { %v880_v17 = vpop.permute.xlu1 %879 }
 0x31b   :  { %v894_v20 = vsel %vm76_vm1, %v874_v37, %v880_v17  ;;  %v883_v50 = vsel %vm76_vm1, %v880_v17, %v882_v14  ;;  %v2245_v14 = vmov 0.0  }
 0x31c   :  { %1274 = vmatprep.mubr.bf16.mxu1 %v894_v20  ;;  %1910 = vmatprep.subr.bf16.mxu0 %v2245_v14 }
 0x31d   :  { %v889_v22 = vpop.permute.xlu0 %888  ;;  %1275 = vmatmul.mubr.bf16.vlgmr.msra.gmra.mrb[4].mxu1 %v873_v49 }
 0x31e   :  { %1284 = vmatpush1.bf16.msra.mxu1 %v2151_v19  ;;  %v887_v23 = vpop.permute.xlu1 %886 }
 0x31f   :  { %v890_v25 = vsel %vm95_vm0, %v887_v23, %v889_v22  ;;  %1285 = vmatprep.subr.bf16.mxu1 %v2156_v21  ;;  %v899_v51 = vsel %vm95_vm0, %v883_v50, %v887_v23 }
 0x320   :  { %1862 = vmatprep.mubr.msk.bf16.mxu1 %vm113_vm3, %v890_v25  ;;  %v2196_v25 = vld [vmem:[%s2960_s3 + $0x60] sm:$0xff]  }
 0x322   :  { %1286 = vmatpush1.bf16.msra.mxu1 %v2154_v24 }
 0x323   :  { %1287 = vmatprep.subr.bf16.mxu1 %v2159_v29 }
 0x326   :  { %1288 = vmatpush1.bf16.msra.mxu1 %v2157_v30 }
 0x327   :  { %1289 = vmatprep.subr.bf16.mxu1 %v2162_v31  ;;  %v2197_v31 = vld [vmem:[%s2960_s3 + $0x68] sm:$0xff]  }
 0x32a   :  { %1290 = vmatpush1.bf16.msra.mxu1 %v2160_v32  ;;  %v2198_v32 = vld [vmem:[%s2960_s3 + $0x70] sm:$0xff]  }
 0x32b   :  { %1291 = vmatprep.subr.bf16.mxu1 %v2165_v33  ;;  %v2199_v33 = vld [vmem:[%s2960_s3 + $0x78] sm:$0xff]  }
 0x32e   :  { %1292 = vmatpush1.bf16.msra.mxu1 %v2163_v34  ;;  %v2200_v34 = vld [vmem:[%s2960_s3 + $0x80] sm:$0xff]  }
 0x32f   :  { %1293 = vmatprep.subr.bf16.mxu1 %v2168_v35  ;;  %v2201_v35 = vld [vmem:[%s2960_s3 + $0x88] sm:$0xff]  }
 0x332   :  { %1294 = vmatpush1.bf16.msra.mxu1 %v2166_v36  ;;  %v2202_v36 = vld [vmem:[%s2960_s3 + $0x90] sm:$0xff]  }
 0x333   :  { %1295 = vmatprep.subr.bf16.mxu1 %v2171_v38  ;;  %v2203_v38 = vld [vmem:[%s2960_s3 + $0x98] sm:$0xff]  }
 0x336   :  { %1296 = vmatpush1.bf16.msra.mxu1 %v2169_v39  ;;  %v2204_v39 = vld [vmem:[%s2960_s3 + $0xa0] sm:$0xff]  }
 0x337   :  { %1297 = vmatprep.subr.bf16.mxu1 %v2174_v40  ;;  %v2205_v40 = vld [vmem:[%s2960_s3 + $0xa8] sm:$0xff]  }
 0x33a   :  { %1298 = vmatpush1.bf16.msra.mxu1 %v2172_v41  ;;  %v2206_v41 = vld [vmem:[%s2960_s3 + $0xb0] sm:$0xff]  }
 0x33b   :  { %1299 = vmatprep.subr.bf16.mxu1 %v2177_v42  ;;  %v2207_v42 = vld [vmem:[%s2960_s3 + $0xb8] sm:$0xff]  }
 0x33e   :  { %1300 = vmatpush1.bf16.msra.mxu1 %v2175_v43  ;;  %v2208_v43 = vld [vmem:[%s2960_s3 + $0xc0] sm:$0xff]  }
 0x33f   :  { %1301 = vmatprep.subr.bf16.mxu1 %v2180_v45  ;;  %v2209_v45 = vld [vmem:[%s2960_s3 + $0xc8] sm:$0xff]  }
 0x342   :  { %1302 = vmatpush1.bf16.msra.mxu1 %v2178_v46  ;;  %v1389_v46 = vld [vmem:[%s2961_s4 + $0x2] ss:$0 sm:$0xff] }
 0x343   :  { %1303 = vmatprep.subr.bf16.mxu1 %v2183_v47 }
 0x346   :  { %1304 = vmatpush1.bf16.msra.mxu1 %v2181_v48 }
 0x347   :  { %1930 = vmatprep.subr.bf16.mxu1 %v2245_v14 }
 0x349   :  { %1316 = vmatmul.mubr.bf16.vlgmr.msra.gmra.mrb[4].mxu1 %v899_v51 }
 0x34a   :  { %1946 = vmatprep.mubr.msk.bf16.mxu1 %vm2246_vm12, %v2245_v14  ;;  %1931 = vmatpush3.bf16.msra.mxu1 %v2204_v39 }
 0x34b   :  { %1932 = vmatprep.subr.bf16.mxu1 %v2245_v14 }
 0x34e   :  { %1933 = vmatpush3.bf16.msra.mxu1 %v2205_v40 }
 0x34f   :  { %1934 = vmatprep.subr.bf16.mxu1 %v2245_v14 }
 0x352   :  { %1935 = vmatpush3.bf16.msra.mxu1 %v2206_v41 }
 0x353   :  { %1936 = vmatprep.subr.bf16.mxu1 %v2245_v14 }
 0x356   :  { %1937 = vmatpush3.bf16.msra.mxu1 %v2207_v42 }
 0x357   :  { %1938 = vmatprep.subr.bf16.mxu1 %v2245_v14 }
 0x35a   :  { %1939 = vmatpush3.bf16.msra.mxu1 %v2208_v43 }
 0x35b   :  { %1940 = vmatprep.subr.bf16.mxu1 %v2245_v14 }
 0x35e   :  { %1941 = vmatpush3.bf16.msra.mxu1 %v2209_v45 }
 0x35f   :  { %1942 = vmatprep.subr.bf16.mxu1 %v2245_v14 }
 0x41c   :  { %v1317_v56 = vpop.f32.mrb[4].mxu1 }
 0x41d   :  { %v1950_v57 = vadd.f32 %v1317_v56, %v961_v53  ;;  %v1319_v26 = vpop.f32.mrb[5].mxu1  ;;  %v2210_v56 = vld [vmem:[%s2960_s3 + $0xd0] sm:$0xff]  }
 0x41e   :  { %v1951_v59 = vadd.f32 %v1319_v26, %v965_v55  ;;  %v1321_v60 = vpop.f32.mrb[6].mxu1  ;;  %1943 = vmatpush3.bf16.msra.mxu1 %v2210_v56  ;;  %v1523_v26 = vld [vmem:[%s2961_s4 + $0x3] ss:$0 sm:$0xff] }
 0x41f   :  { %v1324_v61 = vmax.f32 %v1950_v57, 0.0  ;;  %v1322_v62 = vpop.f32.mrb[7].mxu1  ;;  %1944 = vmatprep.subr.bf16.mxu1 %v2245_v14  ;;  %v2211_v57 = vld [vmem:[%s2960_s3 + $0xd8] sm:$0xff]  }
 0x420   :  { %v1325_v63 = vmax.f32 %v1951_v59, 0.0 }
 0x421   :  { %1327 = vrot.lane.b32.xlu0 %v1324_v61, %s2241_s24 }
 0x422   :  { %1332 = vrot.lane.b32.xlu1 %v1325_v63, %s2241_s24  ;;  %1945 = vmatpush3.bf16.msra.mxu1 %v2211_v57 }
 0x493   :  { %v1328_v6 = vpop.permute.xlu0 %1327 }
 0x494   :  { %v1333_v0 = vpop.permute.xlu1 %1332  ;;  %v1330_v18 = vmax.f32 %v1324_v61, %v1328_v6 }
 0x495   :  { %v1335_v1 = vmax.f32 %v1324_v61, %v1333_v0  ;;  %v1336_v2 = vmax.f32 %v1325_v63, %v1333_v0 }
 0x497   :  { %v1998_v3 = vpack.i.bf16 %v1336_v2, %v1335_v1  ;;  %v1630_v2 = vld [vmem:[%s2961_s4 + $0x4] ss:$0 sm:$0xff] }
 0x499   :  { %1999 = vrot.lane.b32.xlu1 %v1998_v3, %s2238_s28  ;;  %s2247_s28 = smov [#allocation2]  }
 0x49a   :  { %s1726_s9 = sshll.u32 %s2247_s28, 4  ;;  %s1727_s9 = int_to_ptr.vmem [resolvable:$true] %s1726_s9 }
 0x49b   :  { %s2212_s3 = scalar_lea.vmem %s1727_s9, 32  ;;  %p2217_p1 = scmp.lt.s32.totalorder %s1727_s9, %s1727_s9 }
 0x49c   :  { %p2213_p0 = scmp.ne.s32.totalorder %s1727_s9, %s2212_s3  ;;  %p2218_p2 = scmp.lt.s32.totalorder %s2212_s3, %s2212_s3 }
 0x49e   :  { %p2219_p3 = por %p2218_p2, %p2217_p1 }
 0x4a0   :  { %p2220_p4 = pnand %p2219_p3, %p2213_p0 }
 0x50b   :  { %v2000_v37 = vpop.permute.xlu1 %1999 }
 0x50c   :  { %v2002_v49 = vunpack.i.h.bf16 %v2000_v37  ;;  %v2001_v10 = vunpack.i.l.bf16 %v2000_v37 }
 0x50e   :  { %v1343_v44 = vsel %vm95_vm0, %v2001_v10, %v2002_v49 }
 0x50f   :  { %v1345_v54 = vmax.f32 %v1330_v18, %v1343_v44 }
 0x511   :  { %v1346_v17 = vpack.c.bf16 %v1345_v54, %v1345_v54 }
 0x513   :  { %v1351_v27 = vrot.slane %v1346_v17, 2  ;;  %v1348_v19 = vrot.slane %v1346_v17, 1  ;;  %v1354_v20 = vrot.slane %v1346_v17, 3 }
 0x515   :  { %1352 = vrot.lane.b32.xlu1 %v1351_v27, %s2244_s29  ;;  %1349 = vrot.lane.b32.xlu0 %v1348_v19, %s2239_s12 }
 0x519   :  { %1355 = vrot.lane.b32.xlu0 %v1354_v20, %s2237_s20 }
 0x587   :  { %v1350_v21 = vpop.permute.xlu0 %1349  ;;  %v1353_v22 = vpop.permute.xlu1 %1352 }
 0x588   :  { %v1359_v23 = vsel %vm113_vm3, %v1346_v17, %v1350_v21 }
 0x589   :  { %v1361_v30 = vsel %vm666_vm10, %v1359_v23, %v1353_v22 }
 0x58b   :  { %v1356_v24 = vpop.permute.xlu0 %1355 }
 0x58c   :  { %v1364_v29 = vsel %vm76_vm1, %v1353_v22, %v1356_v24 }
 0x58d   :  { %1875 = vmatprep.mubr.msk.bf16.mxu0 %vm147_vm6, %v1364_v29 }
 0x58e   :  { %1498 = vmatmul.mubr.bf16.vlgmr.msra.gmra.mrb[8].mxu0 %v1361_v30 }
 0x58f   :  { %1911 = vmatpush3.bf16.msra.mxu0 %v2196_v25  ;;  %1926 = vmatprep.mubr.msk.bf16.mxu0 %vm2246_vm12, %v2245_v14 }
 0x590   :  { %1912 = vmatprep.subr.bf16.mxu0 %v2245_v14 }
 0x593   :  { %1913 = vmatpush3.bf16.msra.mxu0 %v2197_v31 }
 0x594   :  { %1914 = vmatprep.subr.bf16.mxu0 %v2245_v14 }
 0x597   :  { %1915 = vmatpush3.bf16.msra.mxu0 %v2198_v32 }
 0x598   :  { %1916 = vmatprep.subr.bf16.mxu0 %v2245_v14 }
 0x59b   :  { %1917 = vmatpush3.bf16.msra.mxu0 %v2199_v33 }
 0x59c   :  { %1918 = vmatprep.subr.bf16.mxu0 %v2245_v14 }
 0x59f   :  { %1919 = vmatpush3.bf16.msra.mxu0 %v2200_v34 }
 0x5a0   :  { %1920 = vmatprep.subr.bf16.mxu0 %v2245_v14 }
 0x5a3   :  { %1921 = vmatpush3.bf16.msra.mxu0 %v2201_v35 }
 0x5a4   :  { %1922 = vmatprep.subr.bf16.mxu0 %v2245_v14 }
 0x5a7   :  { %1923 = vmatpush3.bf16.msra.mxu0 %v2202_v36 }
 0x5a8   :  { %1924 = vmatprep.subr.bf16.mxu0 %v2245_v14 }
 0x5ab   :  { %1925 = vmatpush3.bf16.msra.mxu0 %v2203_v38 }
 0x661   :  { %v1499_v47 = vpop.f32.mrb[8].mxu0 }
 0x662   :  { %v1500_v48 = vadd.f32 %v1499_v47, %v1389_v46  ;;  %v1501_v50 = vpop.f32.mrb[9].mxu0 }
 0x663   :  { %v1502_v51 = vpop.f32.mrb[10].mxu0 }
 0x664   :  { %v1505_v52 = vmax.f32 %v1500_v48, 0.0  ;;  %v1503_v53 = vpop.f32.mrb[11].mxu0 }
 0x666   :  { %v1506_v55 = vpack.c.bf16 %v1505_v52, %v1505_v52 }
 0x668   :  { %1927 = vmatmul.mubr.bf16.vlgmr.msra.gmra.mrb[12].mxu0 %v1506_v55 }
 0x73b   :  { %v1606_v59 = vpop.f32.mrb[12].mxu0 }
 0x73c   :  { %v1607_v60 = vadd.f32 %v1606_v59, %v1523_v26  ;;  %v1928_v61 = vpop.f32.mrb[13].mxu0 }
 0x73d   :  { %v1609_v62 = vpop.f32.mrb[14].mxu0 }
 0x73e   :  { %v1612_v63 = vmax.f32 %v1607_v60, 0.0  ;;  %v1929_v0 = vpop.f32.mrb[15].mxu0 }
 0x740   :  { %v1613_v1 = vpack.c.bf16 %v1612_v63, %v1612_v63 }
 0x742   :  { %1947 = vmatmul.mubr.bf16.vlgmr.msra.gmra.mrb[8].mxu1 %v1613_v1 }
 0x815   :  { %v1713_v3 = vpop.f32.mrb[8].mxu1 }
 0x816   :  { %v1714_v5 = vadd.f32 %v1713_v3, %v1630_v2  ;;  %v1948_v28 = vpop.f32.mrb[9].mxu1 }
 0x817   :  { %v1716_v58 = vpop.f32.mrb[10].mxu1 }
 0x818   :  { %1719 = vst [vmem:[#allocation2] sm:$0x3] %v1714_v5  ;;  %v1949_v4 = vpop.f32.mrb[11].mxu1 }
 0x819   :  { %2223 = shalt.err (!%p2220_p4)
}
 0x81a   :  { %s2224_s4 = scalar_lea.hbm %s2962_s5, 32 }
 0x81b   :  { %p2225_p5 = scmp.ne.s32.totalorder %s2962_s5, %s2224_s4  ;;  %p2228_p6 = scmp.lt.u32.totalorder %s2224_s4, %s2962_s5 }
 0x81d   :  { %p2230_p7 = pnand %p2228_p6, %p2225_p5 }
 0x81f   :  { %2233 = shalt.err (!%p2230_p7)
}
 0x820   :  { %1729 = dma.vmem_to_hbm [thread:$0]  %s1727_s9, 32, %s2962_s5, [#allocation3]  }
 0x821   :  { %2234 = dma.done.wait [#allocation3], 32  }
 0x822   :  { %2235 = vsyncadd [#allocation3], 4294967264 }
 0x823   :  { %1733 = vsyncpa [#allocation3], 1 }

</bundles_post_ra>
